<compile_context>
chip_gen: v7x
topology: tpu7x:2x2x1
jax: 0.10.0
libtpu: 0.0.40
codegen_flags: <defaults>
</compile_context>

<pallas_src>
import jax
import jax.numpy as jnp
from jax.experimental import pallas as pl
from jax.experimental.pallas import tpu as pltpu

STD_MIN = 1e-13
THRESHOLD = 20.0

_LANE = 128
_MIB = 1024 * 1024
# Below this, pallas_call fixed cost dominates; XLA fused elementwise is as fast.
_SMALL_INPUT_BYTES = 1 * _MIB


def _softplus_jnp(x):
    """Plain-jnp reference/bypass path (identical math to the kernel)."""
    xf = x.astype(jnp.float32)
    sp = jnp.where(xf > THRESHOLD, xf, jnp.log1p(jnp.exp(jnp.minimum(xf, THRESHOLD))))
    return (sp + STD_MIN).astype(x.dtype)


def _softplus_kernel(x_ref, o_ref):
    x = x_ref[...].astype(jnp.float32)
    # Numerically identical to torch.nn.Softplus(beta=1, threshold=20):
    # exp(x) only contributes where x <= threshold; clamp its input for safety.
    x_safe = jnp.minimum(x, THRESHOLD)
    sp = jnp.where(x > THRESHOLD, x, jnp.log1p(jnp.exp(x_safe)))
    o_ref[...] = (sp + STD_MIN).astype(o_ref.dtype)


def _device_config():
    """Per-generation block target + VMEM cap + TC count (conservative on unknown)."""
    kind = ""
    try:
        kind = jax.devices()[0].device_kind.lower()
    except Exception:
        pass
    is_v5e = ("v5 lite" in kind) or ("v5e" in kind) or ("v5litepod" in kind)
    is_v7 = "v7" in kind
    num_tc = 2 if is_v7 else 1
    if is_v5e or kind == "":
        # 4x buffered 2 MiB blocks fit v5e's 16 MiB default scoped VMEM.
        target_block_bytes = 2 * _MIB
        vmem_cap = 14 * _MIB
    else:
        # v6e / v7x (and other large-VMEM parts): bigger blocks, still well
        # under the 32 MiB default scoped budget (v7x physical VMEM is 64 MiB/TC).
        target_block_bytes = 4 * _MIB
        vmem_cap = 28 * _MIB
    return target_block_bytes, vmem_cap, num_tc


def _sublane_multiple(dtype):
    # dtype-specific sublane packing: f32 -> 8, bf16/f16 -> 16, int8/fp8 -> 32.
    itemsize = jnp.dtype(dtype).itemsize
    return 8 * max(1, 4 // itemsize)


def _round_up(v, m):
    return -(-v // m) * m


def _softplus_2d(x2d):
    """Run the Pallas kernel over a lane-dense (rows, width) slab."""
    rows, width = x2d.shape
    dtype = x2d.dtype
    itemsize = jnp.dtype(dtype).itemsize
    sub = _sublane_multiple(dtype)

    target_block_bytes, vmem_cap, num_tc = _device_config()

    row_bytes = width * itemsize
    block_rows = max(sub, (target_block_bytes // row_bytes) // sub * sub)

    # Guarantee >= 2 grid steps (>= 4 on dual-TC v7x) so the "parallel" axis
    # shards across both TensorCores and input DMA overlaps compute.
    min_steps = 2 * num_tc
    split_rows = max(sub, _round_up(pl.cdiv(rows, min_steps), sub))
    block_rows = min(block_rows, split_rows)
    if block_rows > rows:
        # Tiny slab: fall back to a single full-extent block (always legal).
        block_rows = rows

    grid = (pl.cdiv(rows, block_rows),)

    block_bytes = block_rows * width * itemsize
    vmem_limit = int(min(vmem_cap, 4 * block_bytes + 4 * _MIB))

    n_elems = rows * width
    cost = pl.CostEstimate(
        flops=3 * n_elems,
        transcendentals=2 * n_elems,            # exp + log1p per element
        bytes_accessed=2 * n_elems * itemsize,  # one read + one write stream
    )

    return pl.pallas_call(
        _softplus_kernel,
        out_shape=jax.ShapeDtypeStruct((rows, width), dtype),
        grid_spec=pltpu.PrefetchScalarGridSpec(
            num_scalar_prefetch=0,
            grid=grid,
            in_specs=[pl.BlockSpec((block_rows, width), lambda i: (i, 0))],
            out_specs=pl.BlockSpec((block_rows, width), lambda i: (i, 0)),
        ),
        compiler_params=pltpu.CompilerParams(
            dimension_semantics=("parallel",),
            vmem_limit_bytes=vmem_limit,
        ),
        cost_estimate=cost,
    )(x2d)


def _pick_width(n):
    """Widest lane-dense width (multiple of 128) that divides n, or None."""
    for w in (4096, 2048, 1024, 512, 256, _LANE):
        if n % w == 0:
            return w
    return None


def softplus_pallas(x, *, min_pallas_bytes=_SMALL_INPUT_BYTES):
    """Elementwise softplus(x) + std_min via a Pallas TPU kernel."""
    orig_shape = x.shape
    dtype = x.dtype
    n = x.size
    if n == 0:
        return x
    itemsize = jnp.dtype(dtype).itemsize

    # Small-input bypass: fixed kernel-launch / pipeline cost dominates.
    if n * itemsize < min_pallas_bytes:
        return _softplus_jnp(x)

    flat = x.reshape(-1)
    width = _pick_width(n)
    if width is not None:
        out2d = _softplus_2d(flat.reshape(n // width, width))
        return out2d.reshape(orig_shape)

    # Rare fallback: element count not a multiple of 128. Process the
    # 128-divisible prefix with the kernel (no full-array padding copy) and the
    # <128-element tail with plain jnp.
    n_prefix = (n // _LANE) * _LANE
    if n_prefix == 0:
        return _softplus_jnp(x)
    head = flat[:n_prefix]
    tail = flat[n_prefix:]
    w = _pick_width(n_prefix)
    head_out = _softplus_2d(head.reshape(n_prefix // w, w)).reshape(-1)
    tail_out = _softplus_jnp(tail)
    return jnp.concatenate([head_out, tail_out]).reshape(orig_shape)


if __name__ == "__main__":
    key = jax.random.PRNGKey(0)
    k0, k1, k2, k3 = jax.random.split(key, 4)

    # 1) Small NCHW input consistent with the module; uses the small-input
    #    bypass path by default.
    x_small = jax.random.normal(k0, (2, 4, 16, 16), dtype=jnp.float32) * 5.0
    y_small = softplus_pallas(x_small)
    jax.block_until_ready(y_small)
    assert y_small.shape == x_small.shape and y_small.dtype == x_small.dtype
    assert jnp.allclose(y_small, _softplus_jnp(x_small), atol=1e-6, rtol=1e-6)

    # 2) Same small shape, forced through the Pallas kernel.
    y_small_k = softplus_pallas(x_small, min_pallas_bytes=0)
    jax.block_until_ready(y_small_k)
    assert jnp.allclose(y_small_k, _softplus_jnp(x_small), atol=1e-6, rtol=1e-6)

    # 3) A larger activation (2 MiB) that exercises the tiled multi-step
    #    Pallas pipeline path.
    x_big = jax.random.normal(k1, (8, 16, 64, 64), dtype=jnp.float32) * 5.0
    y_big = softplus_pallas(x_big)
    jax.block_until_ready(y_big)
    assert y_big.shape == x_big.shape and y_big.dtype == x_big.dtype
    assert jnp.allclose(y_big, _softplus_jnp(x_big), atol=1e-6, rtol=1e-6)

    # 4) Odd element count: exercises the prefix-kernel + jnp-tail fallback
    #    (no full-array padding copy).
    x_odd = jax.random.normal(k2, (3, 7, 13), dtype=jnp.float32) * 5.0
    y_odd = softplus_pallas(x_odd, min_pallas_bytes=0)
    jax.block_until_ready(y_odd)
    assert y_odd.shape == x_odd.shape
    assert jnp.allclose(y_odd, _softplus_jnp(x_odd), atol=1e-6, rtol=1e-6)

    # 5) bf16 path (dtype-aware sublane rounding).
    x_bf16 = (jax.random.normal(k3, (8, 16, 64, 64), dtype=jnp.float32) * 5.0).astype(jnp.bfloat16)
    y_bf16 = softplus_pallas(x_bf16)
    jax.block_until_ready(y_bf16)
    assert y_bf16.dtype == jnp.bfloat16
    assert jnp.allclose(y_bf16.astype(jnp.float32),
                        _softplus_jnp(x_bf16).astype(jnp.float32),
                        atol=2e-2, rtol=2e-2)

    print("KERNEL_OK")
</pallas_src>

<mosaic_0001>
module attributes {stable_mosaic.version = 11 : i64} {
  func.func @_softplus_kernel(%arg0: i32, %arg1: memref<1x2048xf32, #tpu.memory_space<vmem>>, %arg2: memref<1x2048xf32, #tpu.memory_space<vmem>>) attributes {dimension_semantics = [#tpu.dimension_semantics<parallel>], iteration_bounds = array<i64: 1>, scalar_prefetch = 0 : i64, scratch_operands = 0 : i64, tpu.core_type = #tpu.core_type<tc>, window_params = [{transform_indices = @transform_0, window_bounds = array<i64: 1, 2048>}, {transform_indices = @transform_1, window_bounds = array<i64: 1, 2048>}]} {
    %c0 = arith.constant 0 : index
    %c0_0 = arith.constant 0 : index
    %0 = vector.load %arg1[%c0, %c0_0] : memref<1x2048xf32, #tpu.memory_space<vmem>>, vector<1x2048xf32>
    %cst = arith.constant 2.000000e+01 : f32
    %1 = vector.broadcast %cst : f32 to vector<1x2048xf32>
    %2 = arith.minimumf %0, %1 : vector<1x2048xf32>
    %cst_1 = arith.constant 2.000000e+01 : f32
    %3 = vector.broadcast %cst_1 : f32 to vector<1x2048xf32>
    %4 = arith.cmpf ogt, %0, %3 : vector<1x2048xf32>
    %5 = math.exp %2 : vector<1x2048xf32>
    %6 = math.log1p %5 : vector<1x2048xf32>
    %7 = arith.select %4, %0, %6 : vector<1x2048xi1>, vector<1x2048xf32>
    %cst_2 = arith.constant 9.99999982E-14 : f32
    %8 = vector.broadcast %cst_2 : f32 to vector<1x2048xf32>
    %9 = arith.addf %7, %8 : vector<1x2048xf32>
    %c0_3 = arith.constant 0 : index
    %c0_4 = arith.constant 0 : index
    %10 = vector.load %arg2[%c0_3, %c0_4] : memref<1x2048xf32, #tpu.memory_space<vmem>>, vector<1x2048xf32>
    tpu.vector_store %arg2[%c0_3, %c0_4], %9 {strides = array<i32>} : memref<1x2048xf32, #tpu.memory_space<vmem>>, vector<1x2048xf32>,
    return
  }
  func.func @transform_0(%arg0: i32) -> (i32, i32) {
    %c0_i32 = arith.constant 0 : i32
    %c0_i32_0 = arith.constant 0 : i32
    return %arg0, %c0_i32 : i32, i32
  }
  func.func @transform_1(%arg0: i32) -> (i32, i32) {
    %c0_i32 = arith.constant 0 : i32
    %c0_i32_0 = arith.constant 0 : i32
    return %arg0, %c0_i32 : i32, i32
  }
}

</mosaic_0001>

<bundles_post_ra>
// kernel: tpu_custom_call.1
= control target key start
LH: loop header
LB: loop body
LE: loop exit
PB: predicated region body
PF: predicated region fallthrough
CT: control target
= control target key end

     0   :  { %6 = vsyncpa [#allocation3], 0  ;;  %s164_s0 = inlined_call_operand.hbm [shape: f32[1,2048], index: 0, kind: input, shape index: {}]   ;;  %s165_s1 = inlined_call_operand.hbm [shape: f32[1,2048], index: 1, kind: output, shape index: {}]  }
   0x1   :  { %7 = vsyncpa [#allocation4], 0  ;;  %s128_s6 = smov [#allocation2]   ;;  %s80_s10 = scalar_lea.hbm %s164_s0, 256 }
   0x2   :  { %s14_s7 = sshll.u32 %s128_s6, 4  ;;  %p81_p0 = scmp.ne.s32.totalorder %s164_s0, %s80_s10  ;;  %s15_s7 = int_to_ptr.vmem [resolvable:$true] %s14_s7 }
   0x3   :  { %p84_p1 = scmp.lt.u32.totalorder %s80_s10, %s164_s0 }
   0x5   :  { %p86_p2 = pnand %p84_p1, %p81_p0 }
   0x7   :  { %89 = shalt.err (!%p86_p2)
}
   0x8   :  { %s90_s15 = scalar_lea.vmem %s15_s7, 256  ;;  %p95_p4 = scmp.lt.s32.totalorder %s15_s7, %s15_s7 }
   0x9   :  { %p91_p3 = scmp.ne.s32.totalorder %s15_s7, %s90_s15  ;;  %p96_p5 = scmp.lt.s32.totalorder %s90_s15, %s90_s15 }
   0xb   :  { %p97_p6 = por %p96_p5, %p95_p4 }
   0xd   :  { %p98_p7 = pnand %p97_p6, %p91_p3 }
   0xf   :  { %101 = shalt.err (!%p98_p7)
}
  0x10   :  { %17 = dma.hbm_to_vmem [thread:$0]  %s164_s0, 256, %s15_s7, [#allocation3]  }
  0x11   :  { %124 = dma.done.wait [#allocation3], 256  }
  0x12   :  { %125 = vsyncadd [#allocation3], 4294967040  ;;  %v21_v0 = vld [vmem:[#allocation2] sm:$0xff]  ;;  %v22_v1 = vld [vmem:[#allocation2 + $0x8] sm:$0xff]  ;;  %s129_s0 = smov [#allocation5]  }
  0x13   :  { %v23_v2 = vmin.f32 %v21_v0, 20.0  ;;  %v24_v3 = vmin.f32 %v22_v1, 20.0  ;;  %vm25_vm1 = vcmp.gt.f32.partialorder %v21_v0, 20.0  ;;  %vm26_vm3 = vcmp.gt.f32.partialorder %v22_v1, 20.0  ;;  %s61_s18 = sshll.u32 %s129_s0, 4  ;;  %s62_s18 = int_to_ptr.vmem [resolvable:$true] %s61_s18 }
  0x14   :  { %s102_s19 = scalar_lea.vmem %s62_s18, 256  ;;  %p107_p9 = scmp.lt.s32.totalorder %s62_s18, %s62_s18 }
  0x15   :  { %v27_v4 = vmul.f32 1.442695, %v23_v2  ;;  %v29_v5 = vmul.f32 1.442695, %v24_v3  ;;  %p103_p8 = scmp.ne.s32.totalorder %s62_s18, %s102_s19  ;;  %p108_p10 = scmp.lt.s32.totalorder %s102_s19, %s102_s19 }
  0x17   :  { %72 = vpow2.f32 %v27_v4  ;;  %p109_p11 = por %p108_p10, %p107_p9 }
  0x18   :  { %74 = vpow2.f32 %v29_v5 }
  0x19   :  { %p110_p12 = pnand %p109_p11, %p103_p8 }
  0x21   :  { %v73_v6 = vpop.eup %72 }
  0x22   :  { %v75_v7 = vpop.eup %74  ;;  %v31_v8 = vadd.f32 1.0, %v73_v6  ;;  %v34_v10 = vmul.f32 -0.5, %v73_v6  ;;  %v37_v13 = vand.u32 2147483647, %v73_v6 }
  0x23   :  { %v40_v9 = vadd.f32 1.0, %v75_v7  ;;  %v43_v11 = vmul.f32 -0.5, %v75_v7  ;;  %v46_v15 = vand.u32 2147483647, %v75_v7 }
  0x24   :  { %76 = vlog2.f32 %v31_v8  ;;  %v35_v12 = vadd.f32 1.0, %v34_v10  ;;  %vm38_vm0 = vcmp.lt.f32.partialorder %v37_v13, 0.0004427343 }
  0x25   :  { %78 = vlog2.f32 %v40_v9  ;;  %v44_v14 = vadd.f32 1.0, %v43_v11  ;;  %vm47_vm2 = vcmp.lt.f32.partialorder %v46_v15, 0.0004427343 }
  0x26   :  { %v36_v16 = vmul.f32 %v73_v6, %v35_v12 }
  0x27   :  { %v45_v18 = vmul.f32 %v75_v7, %v44_v14 }
  0x2e   :  { %v77_v17 = vpop.eup %76 }
  0x2f   :  { %v79_v19 = vpop.eup %78  ;;  %v33_v20 = vmul.f32 0.6931472, %v77_v17 }
  0x30   :  { %v42_v21 = vmul.f32 0.6931472, %v79_v19 }
  0x31   :  { %v39_v22 = vsel %vm38_vm0, %v36_v16, %v33_v20 }
  0x32   :  { %v49_v23 = vsel %vm25_vm1, %v21_v0, %v39_v22  ;;  %v48_v24 = vsel %vm47_vm2, %v45_v18, %v42_v21 }
  0x33   :  { %v51_v25 = vadd.f32 1e-13, %v49_v23  ;;  %v50_v26 = vsel %vm26_vm3, %v22_v1, %v48_v24 }
  0x34   :  { %v52_v27 = vadd.f32 1e-13, %v50_v26 }
  0x35   :  { %53 = vst [vmem:[#allocation5] sm:$0xff] %v51_v25 }
  0x36   :  { %54 = vst [vmem:[#allocation5 + $0x8] sm:$0xff] %v52_v27 }
  0x37   :  { %113 = shalt.err (!%p110_p12)
}
  0x38   :  { %s114_s22 = scalar_lea.hbm %s165_s1, 256 }
  0x39   :  { %p115_p13 = scmp.ne.s32.totalorder %s165_s1, %s114_s22  ;;  %p118_p0 = scmp.lt.u32.totalorder %s114_s22, %s165_s1 }
  0x3b   :  { %p120_p1 = pnand %p118_p0, %p115_p13 }
  0x3d   :  { %123 = shalt.err (!%p120_p1)
}
  0x3e   :  { %64 = dma.vmem_to_hbm [thread:$0]  %s62_s18, 256, %s165_s1, [#allocation4]  }
  0x3f   :  { %126 = dma.done.wait [#allocation4], 256  }
  0x40   :  { %127 = vsyncadd [#allocation4], 4294967040 }
  0x41   :  { %68 = vsyncpa [#allocation3], 1 }
  0x42   :  { %69 = vsyncpa [#allocation4], 1 }

</bundles_post_ra>
